<compile_context>
chip_gen: v6e
topology: v6e:2x2x1
jax: 0.10.0
libtpu: 0.0.40
codegen_flags: <defaults>
</compile_context>

<pallas_src>
import jax
import jax.numpy as jnp
from jax.experimental import pallas as pl
from jax.experimental.pallas import tpu as pltpu

LANES = 128
SUBLANES = 8
MAX_ROW_TILE = 2048  # 2048 x 128 f32 block = 1 MiB


def _round_up(x, m):
    return ((x + m - 1) // m) * m


def _make_l1_log_kernel(row_tile, steps_per_split, rows_valid, needs_mask):
    def kernel(x_ref, t_ref, out_ref, acc_ref):
        i = pl.program_id(1)

        @pl.when(i == 0)
        def _():
            acc_ref[...] = jnp.zeros_like(acc_ref)

        x = x_ref[...].astype(jnp.float32)
        t = t_ref[...].astype(jnp.float32)

        if needs_mask:
            c = pl.program_id(0)
            row_start = (c * steps_per_split + i) * row_tile
            local_row = jax.lax.broadcasted_iota(jnp.int32, (row_tile, 1), 0)
            valid = (row_start + local_row) < rows_valid
            # Replace out-of-range rows BEFORE the log so no NaN/Inf appears.
            x = jnp.where(valid, x, 1.0)
            t = jnp.where(valid, t, 1.0)

        diff = jnp.abs(jnp.log(x) - jnp.log(t))
        # Fold the row tile onto an (8,128) vreg-shaped accumulator: pure VPU
        # adds (sublane-strided), no cross-lane reduce per step.
        acc_ref[...] += diff.reshape(row_tile // SUBLANES, SUBLANES, LANES).sum(axis=0)

        @pl.when(i == pl.num_programs(1) - 1)
        def _():
            out_ref[0] = acc_ref[...]

    return kernel


def l1_log_loss(inpt, target):
    assert inpt.shape == target.shape
    n_elems = inpt.size

    flat_x = inpt.reshape(-1)
    flat_t = target.reshape(-1)

    # Pad only the ragged lane tail (< 128 elems) with 1.0 -> log(1) = 0.
    pad = (-n_elems) % LANES
    if pad:
        flat_x = jnp.concatenate([flat_x, jnp.ones((pad,), flat_x.dtype)])
        flat_t = jnp.concatenate([flat_t, jnp.ones((pad,), flat_t.dtype)])

    rows = (n_elems + pad) // LANES
    x2d = flat_x.reshape(rows, LANES)
    t2d = flat_t.reshape(rows, LANES)

    # Row tile: as large as practical; multiple of 16 so bf16 (16,128) packing
    # is also legal if the caller feeds bf16.
    row_tile = min(MAX_ROW_TILE, _round_up(rows, 16))
    total_steps = pl.cdiv(rows, row_tile)

    # Split the reduction across (up to) 2 TensorCores (v7x megacore); on
    # v5e/v6e the extra "parallel" axis simply runs sequentially.
    nsplit = 2 if total_steps >= 2 else 1
    steps_per_split = pl.cdiv(total_steps, nsplit)

    # Mask needed iff the last block overhangs the array or the last split has
    # redundant (clamped) steps.
    needs_mask = (total_steps * row_tile != rows) or (steps_per_split * nsplit != total_steps)

    def in_map(c, i):
        # Clamp so redundant trailing steps of the last split re-read a valid
        # block; their contribution is masked to zero inside the kernel.
        return (jnp.minimum(c * steps_per_split + i, total_steps - 1), 0)

    kernel = _make_l1_log_kernel(row_tile, steps_per_split, rows, needs_mask)

    partials = pl.pallas_call(
        kernel,
        out_shape=jax.ShapeDtypeStruct((nsplit, SUBLANES, LANES), jnp.float32),
        grid_spec=pltpu.PrefetchScalarGridSpec(
            num_scalar_prefetch=0,
            grid=(nsplit, steps_per_split),
            in_specs=[
                pl.BlockSpec((row_tile, LANES), in_map),
                pl.BlockSpec((row_tile, LANES), in_map),
            ],
            out_specs=pl.BlockSpec((1, SUBLANES, LANES), lambda c, i: (c, 0, 0)),
            scratch_shapes=[pltpu.VMEM((SUBLANES, LANES), jnp.float32)],
        ),
        compiler_params=pltpu.CompilerParams(
            dimension_semantics=("parallel", "arbitrary"),
        ),
    )(x2d, t2d)

    total = jnp.sum(partials)
    return (total / jnp.float32(n_elems)).astype(jnp.float32)


if __name__ == "__main__":
    key = jax.random.PRNGKey(0)
    k1, k2, k3, k4 = jax.random.split(key, 4)

    # Primary small case consistent with the module: batch=2, ch=4, 16x16.
    shape = (2, 4, 16, 16)
    inpt = jax.random.uniform(k1, shape, jnp.float32, minval=0.1, maxval=2.0)
    target = jax.random.uniform(k2, shape, jnp.float32, minval=0.1, maxval=2.0)

    loss = jax.block_until_ready(l1_log_loss(inpt, target))
    ref = jnp.mean(jnp.abs(jnp.log(inpt) - jnp.log(target)))
    assert jnp.allclose(loss, ref, rtol=1e-5, atol=1e-6), (loss, ref)

    # Extra case exercising the optimized paths: 266240 elems -> 2080 rows ->
    # 2-way TensorCore split + masked boundary block.
    shape2 = (2, 2, 256, 260)
    inpt2 = jax.random.uniform(k3, shape2, jnp.float32, minval=0.1, maxval=2.0)
    target2 = jax.random.uniform(k4, shape2, jnp.float32, minval=0.1, maxval=2.0)

    loss2 = jax.block_until_ready(l1_log_loss(inpt2, target2))
    ref2 = jnp.mean(jnp.abs(jnp.log(inpt2) - jnp.log(target2)))
    assert jnp.allclose(loss2, ref2, rtol=1e-5, atol=1e-6), (loss2, ref2)

    print("KERNEL_OK")
</pallas_src>

<mosaic_0001>
module attributes {stable_mosaic.version = 11 : i64} {
  func.func @kernel(%arg0: i32, %arg1: i32, %arg2: memref<16x128xf32, #tpu.memory_space<vmem>>, %arg3: memref<16x128xf32, #tpu.memory_space<vmem>>, %arg4: memref<1x8x128xf32, #tpu.memory_space<vmem>>, %arg5: memref<8x128xf32, #tpu.memory_space<vmem>>) attributes {dimension_semantics = [#tpu.dimension_semantics<parallel>, #tpu.dimension_semantics<arbitrary>], iteration_bounds = array<i64: 1, 1>, scalar_prefetch = 0 : i64, scratch_operands = 1 : i64, tpu.core_type = #tpu.core_type<tc>, window_params = [{transform_indices = @transform_0, window_bounds = array<i64: 16, 128>}, {transform_indices = @transform_1, window_bounds = array<i64: 16, 128>}, {transform_indices = @transform_2, window_bounds = array<i64: 1, 8, 128>}]} {
    %c0_i32 = arith.constant 0 : i32
    %0 = arith.cmpi eq, %arg1, %c0_i32 : i32
    %1 = arith.extui %0 : i1 to i32
    %c0_i32_0 = arith.constant 0 : i32
    %2 = arith.cmpi ne, %1, %c0_i32_0 : i32
    scf.if %2 {
      %cst_10 = arith.constant 0.000000e+00 : f32
      %17 = vector.broadcast %cst_10 : f32 to vector<8x128xf32>
      %c0_11 = arith.constant 0 : index
      %c0_12 = arith.constant 0 : index
      %18 = vector.load %arg5[%c0_11, %c0_12] : memref<8x128xf32, #tpu.memory_space<vmem>>, vector<8x128xf32>
      tpu.vector_store %arg5[%c0_11, %c0_12], %17 {strides = array<i32>} : memref<8x128xf32, #tpu.memory_space<vmem>>, vector<8x128xf32>,
    } else {
    }
    %c0 = arith.constant 0 : index
    %c0_1 = arith.constant 0 : index
    %3 = vector.load %arg2[%c0, %c0_1] : memref<16x128xf32, #tpu.memory_space<vmem>>, vector<16x128xf32>
    %c0_2 = arith.constant 0 : index
    %c0_3 = arith.constant 0 : index
    %4 = vector.load %arg3[%c0_2, %c0_3] : memref<16x128xf32, #tpu.memory_space<vmem>>, vector<16x128xf32>
    %5 = math.log %3 : vector<16x128xf32>
    %6 = math.log %4 : vector<16x128xf32>
    %7 = arith.subf %5, %6 : vector<16x128xf32>
    %8 = math.absf %7 : vector<16x128xf32>
    %c0_4 = arith.constant 0 : index
    %c0_5 = arith.constant 0 : index
    %9 = vector.load %arg5[%c0_4, %c0_5] : memref<8x128xf32, #tpu.memory_space<vmem>>, vector<8x128xf32>
    %10 = vector.shape_cast %8 : vector<16x128xf32> to vector<2x8x128xf32>
    %cst = arith.constant dense<0.000000e+00> : vector<8x128xf32>
    %11 = vector.multi_reduction <add>, %10, %cst [0] : vector<2x8x128xf32> to vector<8x128xf32>
    %12 = arith.addf %9, %11 : vector<8x128xf32>
    %c0_6 = arith.constant 0 : index
    %c0_7 = arith.constant 0 : index
    %13 = vector.load %arg5[%c0_6, %c0_7] : memref<8x128xf32, #tpu.memory_space<vmem>>, vector<8x128xf32>
    tpu.vector_store %arg5[%c0_6, %c0_7], %12 {strides = array<i32>} : memref<8x128xf32, #tpu.memory_space<vmem>>, vector<8x128xf32>,
    %c0_i32_8 = arith.constant 0 : i32
    %14 = arith.cmpi eq, %arg1, %c0_i32_8 : i32
    %15 = arith.extui %14 : i1 to i32
    %c0_i32_9 = arith.constant 0 : i32
    %16 = arith.cmpi ne, %15, %c0_i32_9 : i32
    scf.if %16 {
      %c0_10 = arith.constant 0 : index
      %c0_11 = arith.constant 0 : index
      %17 = vector.load %arg5[%c0_10, %c0_11] : memref<8x128xf32, #tpu.memory_space<vmem>>, vector<8x128xf32>
      %c0_12 = arith.constant 0 : index
      %c0_13 = arith.constant 0 : index
      %c0_14 = arith.constant 0 : index
      %18 = vector.load %arg4[%c0_12, %c0_13, %c0_14] : memref<1x8x128xf32, #tpu.memory_space<vmem>>, vector<1x8x128xf32>
      %19 = vector.shape_cast %18 : vector<1x8x128xf32> to vector<8x128xf32>
      %20 = vector.shape_cast %17 : vector<8x128xf32> to vector<1x8x128xf32>
      tpu.vector_store %arg4[%c0_12, %c0_13, %c0_14], %20 {strides = array<i32>} : memref<1x8x128xf32, #tpu.memory_space<vmem>>, vector<1x8x128xf32>,
    } else {
    }
    return
  }
  func.func @transform_0(%arg0: i32, %arg1: i32) -> (i32, i32) {
    %c1_i32 = arith.constant 1 : i32
    %0 = arith.muli %arg0, %c1_i32 : i32
    %1 = arith.addi %0, %arg1 : i32
    %c0_i32 = arith.constant 0 : i32
    %2 = arith.minsi %1, %c0_i32 : i32
    %c0_i32_0 = arith.constant 0 : i32
    %c0_i32_1 = arith.constant 0 : i32
    return %2, %c0_i32_0 : i32, i32
  }
  func.func @transform_1(%arg0: i32, %arg1: i32) -> (i32, i32) {
    %c1_i32 = arith.constant 1 : i32
    %0 = arith.muli %arg0, %c1_i32 : i32
    %1 = arith.addi %0, %arg1 : i32
    %c0_i32 = arith.constant 0 : i32
    %2 = arith.minsi %1, %c0_i32 : i32
    %c0_i32_0 = arith.constant 0 : i32
    %c0_i32_1 = arith.constant 0 : i32
    return %2, %c0_i32_0 : i32, i32
  }
  func.func @transform_2(%arg0: i32, %arg1: i32) -> (i32, i32, i32) {
    %c0_i32 = arith.constant 0 : i32
    %c0_i32_0 = arith.constant 0 : i32
    %c0_i32_1 = arith.constant 0 : i32
    return %arg0, %c0_i32, %c0_i32_0 : i32, i32, i32
  }
}

</mosaic_0001>

<bundles_post_ra>
// kernel: tpu_custom_call.1
= control target key start
LH: loop header
LB: loop body
LE: loop exit
PB: predicated region body
PF: predicated region fallthrough
CT: control target
= control target key end

     0   :  { %7 = vsyncpa [#allocation4], 0  ;;  %s218_s0 = inlined_call_operand.hbm [shape: f32[16,128], index: 0, kind: input, shape index: {}]   ;;  %s219_s1 = inlined_call_operand.hbm [shape: f32[16,128], index: 1, kind: input, shape index: {}]   ;;  %s220_s2 = inlined_call_operand.hbm [shape: f32[1,8,128], index: 2, kind: output, shape index: {}]  }
   0x1   :  { %8 = vsyncpa [#allocation7], 0 }
   0x2   :  { %9 = vsyncpa [#allocation5], 0  ;;  %s189_s9 = smov [#allocation3]  }
   0x3   :  { %s21_s10 = sshll.u32 %s189_s9, 4  ;;  %s22_s10 = int_to_ptr.vmem [resolvable:$true] %s21_s10 }
   0x4   :  { %s131_s11 = scalar_lea.vmem %s22_s10, 256  ;;  %p136_p1 = scmp.lt.s32.totalorder %s22_s10, %s22_s10 }
   0x5   :  { %p132_p0 = scmp.ne.s32.totalorder %s22_s10, %s131_s11  ;;  %p137_p2 = scmp.lt.s32.totalorder %s131_s11, %s131_s11 }
   0x7   :  { %p138_p3 = por %p137_p2, %p136_p1 }
   0x9   :  { %p139_p4 = pnand %p138_p3, %p132_p0 }
   0xb   :  { %142 = shalt.err (!%p139_p4)
}
   0xc   :  { %s190_s12 = smov 128   ;;  %s191_s13 = smov 8  }
   0xd   :  { %27 = dma.hbm_to_vmem [thread:$0]  %s218_s0, 256, %s22_s10, [#allocation4], %s190_s12, %s190_s12, %s191_s13  }
   0xe   :  { %s192_s16 = smov [#allocation6]  }
   0xf   :  { %s39_s17 = sshll.u32 %s192_s16, 4  ;;  %s40_s17 = int_to_ptr.vmem [resolvable:$true] %s39_s17 }
  0x10   :  { %s151_s18 = scalar_lea.vmem %s40_s17, 256  ;;  %p156_p6 = scmp.lt.s32.totalorder %s40_s17, %s40_s17 }
  0x11   :  { %p152_p5 = scmp.ne.s32.totalorder %s40_s17, %s151_s18  ;;  %p157_p7 = scmp.lt.s32.totalorder %s151_s18, %s151_s18 }
  0x13   :  { %p158_p8 = por %p157_p7, %p156_p6 }
  0x15   :  { %p159_p9 = pnand %p158_p8, %p152_p5 }
  0x17   :  { %162 = shalt.err (!%p159_p9)
}
  0x18   :  { %45 = dma.hbm_to_vmem [thread:$0]  %s219_s1, 256, %s40_s17, [#allocation7], %s190_s12, %s190_s12, %s191_s13  }
  0x19   :  { %183 = dma.done.wait [#allocation4], 256  }
  0x1a   :  { %184 = vsyncadd [#allocation4], 4294967040 }
  0x1b   :  { %185 = dma.done.wait [#allocation7], 256  }
  0x1c   :  { %186 = vsyncadd [#allocation7], 4294967040  ;;  %v65_v0 = vld [vmem:[#allocation3] sm:$0xff]  ;;  %v66_v1 = vld [vmem:[#allocation3 + $0x8] sm:$0xff]  ;;  %s193_s0 = smov [#allocation8]  }
  0x1d   :  { %v67_v2 = vld [vmem:[#allocation6] sm:$0xff]  ;;  %v68_v3 = vld [vmem:[#allocation6 + $0x8] sm:$0xff]  ;;  %115 = vlog2.f32 %v65_v0  ;;  %s96_s1 = sshll.u32 %s193_s0, 4  ;;  %s97_s1 = int_to_ptr.vmem [resolvable:$true] %s96_s1 }
  0x1e   :  { %117 = vlog2.f32 %v66_v1  ;;  %s163_s21 = scalar_lea.vmem %s97_s1, 128  ;;  %p168_p11 = scmp.lt.s32.totalorder %s97_s1, %s97_s1 }
  0x1f   :  { %119 = vlog2.f32 %v67_v2  ;;  %p164_p10 = scmp.ne.s32.totalorder %s97_s1, %s163_s21  ;;  %p169_p12 = scmp.lt.s32.totalorder %s163_s21, %s163_s21 }
  0x20   :  { %121 = vlog2.f32 %v68_v3 }
  0x21   :  { %p170_p13 = por %p169_p12, %p168_p11 }
  0x23   :  { %p171_p0 = pnand %p170_p13, %p164_p10 }
  0x2a   :  { %v116_v4 = vpop.eup %115 }
  0x2b   :  { %v118_v5 = vpop.eup %117  ;;  %v70_v6 = vmul.f32 0.6931472, %v116_v4 }
  0x2c   :  { %v120_v7 = vpop.eup %119  ;;  %v72_v8 = vmul.f32 0.6931472, %v118_v5 }
  0x2d   :  { %v122_v9 = vpop.eup %121  ;;  %v74_v10 = vmul.f32 0.6931472, %v120_v7 }
  0x2e   :  { %v76_v11 = vmul.f32 0.6931472, %v122_v9 }
  0x2f   :  { %v77_v12 = vsub.f32 %v70_v6, %v74_v10 }
  0x30   :  { %v78_v13 = vsub.f32 %v72_v8, %v76_v11 }
  0x31   :  { %v79_v14 = vand.u32 2147483647, %v77_v12 }
  0x32   :  { %v80_v15 = vand.u32 2147483647, %v78_v13 }
  0x34   :  { %v82_v16 = vadd.f32 %v80_v15, %v79_v14 }
  0x36   :  { %89 = vst [vmem:[#allocation8] sm:$0xff] %v82_v16 }
  0x37   :  { %174 = shalt.err (!%p171_p0)
}
  0x38   :  { %99 = dma.vmem_to_hbm [thread:$0]  %s97_s1, 128, %s220_s2, [#allocation5]  }
  0x39   :  { %187 = dma.done.wait [#allocation5], 128  }
  0x3a   :  { %188 = vsyncadd [#allocation5], 4294967168 }
  0x3b   :  { %103 = vsyncpa [#allocation4], 1 }
  0x3c   :  { %104 = vsyncpa [#allocation7], 1 }
  0x3d   :  { %105 = vsyncpa [#allocation5], 1 }

</bundles_post_ra>
